<compile_context>
chip_gen: v6e
topology: v6e:2x2x1
jax: 0.10.0
libtpu: 0.0.40
codegen_flags: <defaults>
</compile_context>

<pallas_src>
import functools

import jax
import jax.numpy as jnp
from jax.experimental import pallas as pl
from jax.experimental.pallas import tpu as pltpu


def _meanpool_conv_kernel(x_ref, w_ref, b_ref, o_ref, pad_ref, *,
                          K, pad, Cin, W, Cout, Hp, Wp, Bblk):
    # x_ref   : (Bblk, Hp, 2*W*Cin)        NHWC input, lane dim = (h-pair, w, cin)
    # w_ref   : (K*K*Cin, Cout)            bf16 im2col weights (0.25 pre-folded)
    # b_ref   : (1, Cout)                  f32 bias
    # o_ref   : (Bblk*Hp*Wp, Cout)         matmul-layout output block (no relayout)
    # pad_ref : (Bblk, Hp+2p, Wp+2p, Cin)  bf16 VMEM scratch for 'same' padding
    half = W * Cin
    x = x_ref[...]

    # ---- 2x2 mean pool, stride 2 (the 1/4 is folded into the conv weights).
    # H-pool: the two row partners are the two contiguous lane halves (dense).
    xs = x[..., :half].astype(jnp.float32) + x[..., half:].astype(jnp.float32)
    # W-pool: regroup lanes (w, cin) -> (wp, 2*Cin); partners are the two
    # contiguous Cin-wide halves.  Adds stay f32 (v5e VPU has no bf16); a
    # single cast to bf16 right before the MXU feed.
    xs = xs.reshape(Bblk, Hp, Wp, 2 * Cin)
    pooled = (xs[..., :Cin] + xs[..., Cin:]).astype(pad_ref.dtype)

    # ---- 'same' zero padding: one zero-fill + one interior slice store into a
    # VMEM scratch (one copy of the pooled data instead of two full concats).
    # The scratch is fully rewritten every step, so the batch grid axis stays
    # safely "parallel" across v7x's two TensorCores.
    if pad > 0:
        pad_ref[...] = jnp.zeros_like(pad_ref)
        pad_ref[:, pad:pad + Hp, pad:pad + Wp, :] = pooled
    else:
        pad_ref[...] = pooled

    # ---- im2col: K*K static window slices, ONE lane concat, ONE reshape,
    # then a single bf16 matmul with f32 accumulation.
    cols = [pad_ref[:, kh:kh + Hp, kw:kw + Wp, :]
            for kh in range(K) for kw in range(K)]
    lhs = jnp.concatenate(cols, axis=-1)               # (Bblk, Hp, Wp, K*K*Cin)
    lhs = lhs.reshape(Bblk * Hp * Wp, K * K * Cin)     # (M, K*K*Cin) bf16

    acc = jnp.dot(lhs, w_ref[...], preferred_element_type=jnp.float32)
    acc = acc + b_ref[...]                             # (M, Cout), f32

    # Direct store in matmul layout; the wrapper reshapes to NCHW in XLA.
    o_ref[...] = acc.astype(o_ref.dtype)


def _round_up(x, m):
    return ((x + m - 1) // m) * m


def mean_pool_conv(x_nchw, w_oihw, bias, *, kernel_size):
    """MeanPoolConv forward: (N, Cin, H, W) -> (N, Cout, H//2, W//2)."""
    N, Cin, H, W = x_nchw.shape
    Cout = w_oihw.shape[0]
    K = kernel_size
    # 'same' padding (pad=(K-1)//2) only reproduces the module for odd K.
    assert K % 2 == 1, "MeanPoolConv kernel assumes an odd kernel_size"
    assert H % 2 == 0 and W % 2 == 0, "spatial dims must be even for 2x2 pooling"
    pad = (K - 1) // 2
    Hp, Wp = H // 2, W // 2

    # ---- layout glue only (XLA side, no kernel compute):
    # NCHW -> NHWC -> (N, Hp, 2*W*Cin): a pure reshape; the H pool-partners are
    # the two lane halves and the input-block lane dim is dense (2*W*Cin wide).
    x_g = jnp.transpose(x_nchw, (0, 2, 3, 1)).reshape(N, Hp, 2 * W * Cin)
    # OIHW -> HWIO -> (K*K*Cin, Cout); fold the 2x2-mean 0.25 into the weights
    # and feed the MXU in bf16 (f32 accumulation happens in the kernel).
    w_mat = (jnp.transpose(w_oihw, (2, 3, 1, 0)).reshape(K * K * Cin, Cout)
             * 0.25).astype(jnp.bfloat16)
    b2 = bias.astype(jnp.float32).reshape(1, Cout)

    # ---- generation-aware VMEM budgeting.
    try:
        vmem_cap = int(pltpu.get_tpu_info().vmem_capacity_bytes)
    except Exception:
        vmem_cap = 64 * 1024 * 1024                    # assume v7x if unknown
    if vmem_cap >= 128 * 1024 * 1024:                  # v5e / v6e: big blocks
        budget, vmem_limit, split_cores = 20 << 20, 96 << 20, False
    else:                                              # v7x (64 MiB physical)
        budget, vmem_limit, split_cores = 10 << 20, 32 << 20, True

    # Per-batch-element working set: (8,128) lane/sublane padding aware and
    # counting the 2x double-buffering on the pipelined input/output blocks.
    isz = jnp.dtype(x_nchw.dtype).itemsize
    per_elem = (
        2 * _round_up(Hp, 8) * _round_up(2 * W * Cin, 128) * isz          # in blk (x2)
        + 2 * Hp * Wp * _round_up(Cout, 128) * isz                        # out blk (x2)
        + (Hp + 2 * pad) * _round_up(Wp + 2 * pad, 8) * _round_up(Cin, 128) * 2  # pad scratch
        + _round_up(Hp, 8) * _round_up(W * Cin, 128) * 4                  # f32 H-pool temp
        + Hp * _round_up(Wp, 8) * _round_up(Cin, 128) * 4                 # f32 W-pool temp
        + Hp * Wp * _round_up(K * K * Cin, 128) * 2                       # bf16 im2col LHS
        + Hp * Wp * _round_up(Cout, 128) * 4                              # f32 matmul result
    )
    fixed = 2 * (_round_up(K * K * Cin, 16) * _round_up(Cout, 128) * 2    # bf16 weights
                 + 8 * _round_up(Cout, 128) * 4)                          # f32 bias
    bblk = max(1, min(N, (budget - fixed) // max(per_elem, 1)))
    if split_cores and N >= 2:
        # Guarantee >= 2 grid steps so the ("parallel",) batch axis actually
        # splits across v7x's two TensorCores.
        bblk = min(bblk, pl.cdiv(N, 2))
    # Keep the grid exact and the output block (8, .)-tileable.
    while bblk > 1 and (N % bblk or (bblk * Hp * Wp) % 8):
        bblk -= 1
    if N % bblk or ((bblk * Hp * Wp) % 8 and bblk * Hp * Wp != N * Hp * Wp):
        bblk = N                                       # single full-block fallback

    kernel = functools.partial(
        _meanpool_conv_kernel, K=K, pad=pad, Cin=Cin, W=W, Cout=Cout,
        Hp=Hp, Wp=Wp, Bblk=bblk)

    out_mat = pl.pallas_call(
        kernel,
        out_shape=jax.ShapeDtypeStruct((N * Hp * Wp, Cout), x_nchw.dtype),
        grid=(N // bblk,),
        in_specs=[
            pl.BlockSpec((bblk, Hp, 2 * W * Cin), lambda n: (n, 0, 0)),
            pl.BlockSpec((K * K * Cin, Cout), lambda n: (0, 0)),
            pl.BlockSpec((1, Cout), lambda n: (0, 0)),
        ],
        out_specs=pl.BlockSpec((bblk * Hp * Wp, Cout), lambda n: (n, 0)),
        scratch_shapes=[
            pltpu.VMEM((bblk, Hp + 2 * pad, Wp + 2 * pad, Cin), jnp.bfloat16),
        ],
        compiler_params=pltpu.CompilerParams(
            dimension_semantics=("parallel",),         # batch axis carries no state
            vmem_limit_bytes=vmem_limit,
        ),
    )(x_g, w_mat, b2)

    # (N*Hp*Wp, Cout) -> NCHW: pure XLA relayout outside the kernel.
    out_nhwc = out_mat.reshape(N, Hp, Wp, Cout)
    return jnp.transpose(out_nhwc, (0, 3, 1, 2))


def _reference(x, w, b, kernel_size):
    """Pure-JAX reference matching the PyTorch module."""
    pad = (kernel_size - 1) // 2
    pooled = (x[:, :, ::2, ::2] + x[:, :, 1::2, ::2]
              + x[:, :, ::2, 1::2] + x[:, :, 1::2, 1::2]) / 4.0
    out = jax.lax.conv_general_dilated(
        pooled, w, window_strides=(1, 1),
        padding=[(pad, pad), (pad, pad)],
        dimension_numbers=("NCHW", "OIHW", "NCHW"))
    return out + b[None, :, None, None]


if __name__ == "__main__":
    # Small shapes consistent with the module: batch=2, in_channels=4,
    # out_channels=8, spatial 16x16, kernel_size=3.
    N, Cin, Cout, H, W, K = 2, 4, 8, 16, 16, 3

    key = jax.random.PRNGKey(0)
    kx, kw, kb = jax.random.split(key, 3)
    x = jax.random.normal(kx, (N, Cin, H, W), jnp.float32)
    # Deterministic synthetic parameters (shapes match nn.Conv2d(Cin, Cout, K)).
    w = 0.1 * jax.random.normal(kw, (Cout, Cin, K, K), jnp.float32)   # OIHW
    b = 0.1 * jax.random.normal(kb, (Cout,), jnp.float32)

    out = jax.block_until_ready(mean_pool_conv(x, w, b, kernel_size=K))
    ref = jax.block_until_ready(_reference(x, w, b, K))

    assert out.shape == (N, Cout, H // 2, W // 2), out.shape
    assert jnp.allclose(out, ref, atol=5e-2, rtol=5e-2), (
        float(jnp.max(jnp.abs(out - ref))))

    print("KERNEL_OK")
</pallas_src>

<mosaic_0001>
module attributes {stable_mosaic.version = 11 : i64} {
  func.func @_meanpool_conv_kernel(%arg0: i32, %arg1: memref<1x8x128xf32, #tpu.memory_space<vmem>>, %arg2: memref<36x8xbf16, #tpu.memory_space<vmem>>, %arg3: memref<1x8xf32, #tpu.memory_space<vmem>>, %arg4: memref<64x8xf32, #tpu.memory_space<vmem>>, %arg5: memref<1x10x10x4xbf16, #tpu.memory_space<vmem>>) attributes {dimension_semantics = [#tpu.dimension_semantics<parallel>], iteration_bounds = array<i64: 2>, scalar_prefetch = 0 : i64, scratch_operands = 1 : i64, tpu.core_type = #tpu.core_type<tc>, window_params = [{transform_indices = @transform_0, window_bounds = array<i64: 1, 8, 128>}, {pipeline_mode = #tpu.pipeline_mode<synchronous>, transform_indices = @transform_1, window_bounds = array<i64: 36, 8>}, {pipeline_mode = #tpu.pipeline_mode<synchronous>, transform_indices = @transform_2, window_bounds = array<i64: 1, 8>}, {transform_indices = @transform_3, window_bounds = array<i64: 64, 8>}]} {
    %c0 = arith.constant 0 : index
    %c0_0 = arith.constant 0 : index
    %c0_1 = arith.constant 0 : index
    %0 = vector.load %arg1[%c0, %c0_0, %c0_1] : memref<1x8x128xf32, #tpu.memory_space<vmem>>, vector<1x8x128xf32>
    %1 = vector.extract_strided_slice %0 {offsets = [0, 0, 0], sizes = [1, 8, 64], strides = [1, 1, 1]} : vector<1x8x128xf32> to vector<1x8x64xf32>
    %2 = vector.extract_strided_slice %0 {offsets = [0, 0, 64], sizes = [1, 8, 64], strides = [1, 1, 1]} : vector<1x8x128xf32> to vector<1x8x64xf32>
    %3 = arith.addf %1, %2 : vector<1x8x64xf32>
    %4 = vector.shape_cast %3 : vector<1x8x64xf32> to vector<1x8x8x8xf32>
    %5 = vector.extract_strided_slice %4 {offsets = [0, 0, 0, 0], sizes = [1, 8, 8, 4], strides = [1, 1, 1, 1]} : vector<1x8x8x8xf32> to vector<1x8x8x4xf32>
    %6 = vector.extract_strided_slice %4 {offsets = [0, 0, 0, 4], sizes = [1, 8, 8, 4], strides = [1, 1, 1, 1]} : vector<1x8x8x8xf32> to vector<1x8x8x4xf32>
    %7 = arith.addf %5, %6 : vector<1x8x8x4xf32>
    %8 = arith.truncf %7 : vector<1x8x8x4xf32> to vector<1x8x8x4xbf16>
    %cst = arith.constant 0.000000e+00 : bf16
    %9 = vector.broadcast %cst : bf16 to vector<1x10x10x4xbf16>
    %c0_2 = arith.constant 0 : index
    %c0_3 = arith.constant 0 : index
    %c0_4 = arith.constant 0 : index
    %c0_5 = arith.constant 0 : index
    %10 = vector.load %arg5[%c0_2, %c0_3, %c0_4, %c0_5] : memref<1x10x10x4xbf16, #tpu.memory_space<vmem>>, vector<1x10x10x4xbf16>
    tpu.vector_store %arg5[%c0_2, %c0_3, %c0_4, %c0_5], %9 {strides = array<i32>} : memref<1x10x10x4xbf16, #tpu.memory_space<vmem>>, vector<1x10x10x4xbf16>,
    %c0_6 = arith.constant 0 : index
    %c1 = arith.constant 1 : index
    %c1_7 = arith.constant 1 : index
    %c0_8 = arith.constant 0 : index
    %11 = vector.load %arg5[%c0_6, %c1, %c1_7, %c0_8] : memref<1x10x10x4xbf16, #tpu.memory_space<vmem>>, vector<1x8x8x4xbf16>
    tpu.vector_store %arg5[%c0_6, %c1, %c1_7, %c0_8], %8 {strides = array<i32>} : memref<1x10x10x4xbf16, #tpu.memory_space<vmem>>, vector<1x8x8x4xbf16>,
    %c0_9 = arith.constant 0 : index
    %c0_10 = arith.constant 0 : index
    %c0_11 = arith.constant 0 : index
    %c0_12 = arith.constant 0 : index
    %12 = vector.load %arg5[%c0_9, %c0_10, %c0_11, %c0_12] : memref<1x10x10x4xbf16, #tpu.memory_space<vmem>>, vector<1x8x8x4xbf16>
    %c0_13 = arith.constant 0 : index
    %c0_14 = arith.constant 0 : index
    %c1_15 = arith.constant 1 : index
    %c0_16 = arith.constant 0 : index
    %13 = vector.load %arg5[%c0_13, %c0_14, %c1_15, %c0_16] : memref<1x10x10x4xbf16, #tpu.memory_space<vmem>>, vector<1x8x8x4xbf16>
    %c0_17 = arith.constant 0 : index
    %c0_18 = arith.constant 0 : index
    %c2 = arith.constant 2 : index
    %c0_19 = arith.constant 0 : index
    %14 = vector.load %arg5[%c0_17, %c0_18, %c2, %c0_19] : memref<1x10x10x4xbf16, #tpu.memory_space<vmem>>, vector<1x8x8x4xbf16>
    %c0_20 = arith.constant 0 : index
    %c1_21 = arith.constant 1 : index
    %c0_22 = arith.constant 0 : index
    %c0_23 = arith.constant 0 : index
    %15 = vector.load %arg5[%c0_20, %c1_21, %c0_22, %c0_23] : memref<1x10x10x4xbf16, #tpu.memory_space<vmem>>, vector<1x8x8x4xbf16>
    %c0_24 = arith.constant 0 : index
    %c1_25 = arith.constant 1 : index
    %c1_26 = arith.constant 1 : index
    %c0_27 = arith.constant 0 : index
    %16 = vector.load %arg5[%c0_24, %c1_25, %c1_26, %c0_27] : memref<1x10x10x4xbf16, #tpu.memory_space<vmem>>, vector<1x8x8x4xbf16>
    %c0_28 = arith.constant 0 : index
    %c1_29 = arith.constant 1 : index
    %c2_30 = arith.constant 2 : index
    %c0_31 = arith.constant 0 : index
    %17 = vector.load %arg5[%c0_28, %c1_29, %c2_30, %c0_31] : memref<1x10x10x4xbf16, #tpu.memory_space<vmem>>, vector<1x8x8x4xbf16>
    %c0_32 = arith.constant 0 : index
    %c2_33 = arith.constant 2 : index
    %c0_34 = arith.constant 0 : index
    %c0_35 = arith.constant 0 : index
    %18 = vector.load %arg5[%c0_32, %c2_33, %c0_34, %c0_35] : memref<1x10x10x4xbf16, #tpu.memory_space<vmem>>, vector<1x8x8x4xbf16>
    %c0_36 = arith.constant 0 : index
    %c2_37 = arith.constant 2 : index
    %c1_38 = arith.constant 1 : index
    %c0_39 = arith.constant 0 : index
    %19 = vector.load %arg5[%c0_36, %c2_37, %c1_38, %c0_39] : memref<1x10x10x4xbf16, #tpu.memory_space<vmem>>, vector<1x8x8x4xbf16>
    %c0_40 = arith.constant 0 : index
    %c2_41 = arith.constant 2 : index
    %c2_42 = arith.constant 2 : index
    %c0_43 = arith.constant 0 : index
    %20 = vector.load %arg5[%c0_40, %c2_41, %c2_42, %c0_43] : memref<1x10x10x4xbf16, #tpu.memory_space<vmem>>, vector<1x8x8x4xbf16>
    %21 = tpu.concatenate %12, %13, %14, %15, %16, %17, %18, %19, %20 in 3 : vector<1x8x8x4xbf16>, vector<1x8x8x4xbf16>, vector<1x8x8x4xbf16>, vector<1x8x8x4xbf16>, vector<1x8x8x4xbf16>, vector<1x8x8x4xbf16>, vector<1x8x8x4xbf16>, vector<1x8x8x4xbf16>, vector<1x8x8x4xbf16> -> vector<1x8x8x36xbf16>
    %22 = vector.shape_cast %21 : vector<1x8x8x36xbf16> to vector<64x36xbf16>
    %c0_44 = arith.constant 0 : index
    %c0_45 = arith.constant 0 : index
    %23 = vector.load %arg2[%c0_44, %c0_45] : memref<36x8xbf16, #tpu.memory_space<vmem>>, vector<36x8xbf16>
    %cst_46 = arith.constant dense<0.000000e+00> : vector<64x8xf32>
    %24 = tpu.matmul %22, %23, %cst_46 {dimension_numbers = #tpu.dot_dimension_numbers<[1], [0], [0], [1], [0, 0, 1, 1], [], []>} : vector<64x36xbf16>, vector<36x8xbf16>, vector<64x8xf32> -> vector<64x8xf32>
    %c0_47 = arith.constant 0 : index
    %c0_48 = arith.constant 0 : index
    %25 = vector.load %arg3[%c0_47, %c0_48] : memref<1x8xf32, #tpu.memory_space<vmem>>, vector<1x8xf32>
    %26 = vector.broadcast %25 : vector<1x8xf32> to vector<64x8xf32>
    %27 = arith.addf %24, %26 : vector<64x8xf32>
    %c0_49 = arith.constant 0 : index
    %c0_50 = arith.constant 0 : index
    %28 = vector.load %arg4[%c0_49, %c0_50] : memref<64x8xf32, #tpu.memory_space<vmem>>, vector<64x8xf32>
    tpu.vector_store %arg4[%c0_49, %c0_50], %27 {strides = array<i32>} : memref<64x8xf32, #tpu.memory_space<vmem>>, vector<64x8xf32>,
    return
  }
  func.func @transform_0(%arg0: i32) -> (i32, i32, i32) {
    %c0_i32 = arith.constant 0 : i32
    %c0_i32_0 = arith.constant 0 : i32
    %c0_i32_1 = arith.constant 0 : i32
    return %arg0, %c0_i32, %c0_i32_0 : i32, i32, i32
  }
  func.func @transform_1(%arg0: i32) -> (i32, i32) {
    %c0_i32 = arith.constant 0 : i32
    %c0_i32_0 = arith.constant 0 : i32
    %c0_i32_1 = arith.constant 0 : i32
    return %c0_i32, %c0_i32_0 : i32, i32
  }
  func.func @transform_2(%arg0: i32) -> (i32, i32) {
    %c0_i32 = arith.constant 0 : i32
    %c0_i32_0 = arith.constant 0 : i32
    %c0_i32_1 = arith.constant 0 : i32
    return %c0_i32, %c0_i32_0 : i32, i32
  }
  func.func @transform_3(%arg0: i32) -> (i32, i32) {
    %c0_i32 = arith.constant 0 : i32
    %c0_i32_0 = arith.constant 0 : i32
    return %arg0, %c0_i32 : i32, i32
  }
}

</mosaic_0001>

<bundles_post_ra>
// kernel: tpu_custom_call.1
= control target key start
LH: loop header
LB: loop body
LE: loop exit
PB: predicated region body
PF: predicated region fallthrough
CT: control target
= control target key end

     0   :  { %s1776_s12 = smov 0   ;;  %s2304_s0 = inlined_call_operand.vmem [shape: f32[2,8,128], index: 0, kind: input, shape index: {}]   ;;  %s2305_s1 = inlined_call_operand.vmem [shape: bf16[36,8], index: 1, kind: input, shape index: {}]   ;;  %s2306_s2 = inlined_call_operand.vmem [shape: f32[1,8], index: 2, kind: input, shape index: {}]   ;;  %s2307_s3 = inlined_call_operand.vmem [shape: f32[128,8], index: 3, kind: output, shape index: {}]  }
   0x1 LB: > { %s1782_s13 = sadd.s32 4294967295, %s1734_s12   ;;  %p1505_p0 = scmp.ge.s32.totalorder %s1734_s12, 1  ;;  %s1734_s12 = sphi %s1776_s12, %s13_s12  }
   0x2   : > { %p136_p1 = scmp.lt.s32.totalorder %s1734_s12, 3 }
   0x4   : > { %p137_p2 = pnand %p1505_p0, %p136_p1 }
   0x6   : > { %140 = sbr.rel (%p137_p2) target bundleno = 852 (0x354), region = 32 }
   0xb   : > { %p159_p3 = scmp.lt.s32.totalorder %s1782_s13, 1  ;;  %s1736_s19 = smov 64   ;;  %vm382_vm0 = vcmask 27648   ;;  %vm384_vm1 = vcmask 24576   ;;  %v1737_v1 = vmov 0   ;;  %v203_v24 = vlaneseq }
   0xc   : > { %402 = vst.msk [vmem:[#allocation2 + $0x48] sm:$0xf] %vm382_vm0, %v1737_v1  ;;  %383 = vst.msk [vmem:[#allocation2] sm:$0xf] %vm382_vm0, %v1737_v1  ;;  %s1738_s20 = smov 112   ;;  %s1739_s21 = smov 120  }
   0xd   : > { %s160_s14 = scalar_select %p159_p3, %s1782_s13, 1  ;;  %403 = vst.msk [vmem:[#allocation2 + $0x4c] sm:$0x1] %vm384_vm1, %v1737_v1  ;;  %385 = vst.msk [vmem:[#allocation2 + $0x4] sm:$0x1] %vm384_vm1, %v1737_v1  ;;  %v204_v28 = vshrl.u32 %v203_v24, 7 }
   0xe   : > { %386 = vst.msk [vmem:[#allocation2 + $0x8] sm:$0xf] %vm382_vm0, %v1737_v1  ;;  %388 = vst.msk [vmem:[#allocation2 + $0x10] sm:$0xf] %vm382_vm0, %v1737_v1  ;;  %s1740_s22 = smov 104   ;;  %s1741_s23 = smov 96  }
   0xf   : > { %s1506_s15 = sshll.u32 %s160_s14, 3  ;;  %387 = vst.msk [vmem:[#allocation2 + $0xc] sm:$0x1] %vm384_vm1, %v1737_v1  ;;  %389 = vst.msk [vmem:[#allocation2 + $0x14] sm:$0x1] %vm384_vm1, %v1737_v1  ;;  %s1742_s24 = smov 88  }
  0x10   : > { %s162_s18 = scalar_lea.vmem %s2304_s0, %s1506_s15  ;;  %390 = vst.msk [vmem:[#allocation2 + $0x18] sm:$0xf] %vm382_vm0, %v1737_v1  ;;  %392 = vst.msk [vmem:[#allocation2 + $0x20] sm:$0xf] %vm382_vm0, %v1737_v1  ;;  %s1743_s25 = smov 80   ;;  %vm1368_vm6 = vcmask 1041408  }
  0x11   : > { %v170_v0 = vld [vmem:[%s162_s18] sm:$0xff]  ;;  %391 = vst.msk [vmem:[#allocation2 + $0x1c] sm:$0x1] %vm384_vm1, %v1737_v1  ;;  %393 = vst.msk [vmem:[#allocation2 + $0x24] sm:$0x1] %vm384_vm1, %v1737_v1  ;;  %s1744_s26 = smov 72  }
  0x12   : > { %172 = vrot.lane.b32.xlu0 %v170_v0, %s1736_s19  ;;  %394 = vst.msk [vmem:[#allocation2 + $0x28] sm:$0xf] %vm382_vm0, %v1737_v1  ;;  %396 = vst.msk [vmem:[#allocation2 + $0x30] sm:$0xf] %vm382_vm0, %v1737_v1  ;;  %s1745_s27 = smov 4   ;;  %s1746_s28 = smov 24  }
  0x13   : > { %395 = vst.msk [vmem:[#allocation2 + $0x2c] sm:$0x1] %vm384_vm1, %v1737_v1  ;;  %397 = vst.msk [vmem:[#allocation2 + $0x34] sm:$0x1] %vm384_vm1, %v1737_v1  ;;  %v563_v2 = vld [vmem:[#allocation2] sm:$0xf] }
  0x14   : > { %398 = vst.msk [vmem:[#allocation2 + $0x38] sm:$0xf] %vm382_vm0, %v1737_v1  ;;  %400 = vst.msk [vmem:[#allocation2 + $0x40] sm:$0xf] %vm382_vm0, %v1737_v1  ;;  %v571_v3 = vld [vmem:[#allocation2 + $0x4] sm:$0x1] }
  0x15   : > { %399 = vst.msk [vmem:[#allocation2 + $0x3c] sm:$0x1] %vm384_vm1, %v1737_v1  ;;  %401 = vst.msk [vmem:[#allocation2 + $0x44] sm:$0x1] %vm384_vm1, %v1737_v1  ;;  %v1517_v4 = vcombine.low %v563_v2, %v571_v3  ;;  %v619_v8 = vld [vmem:[#allocation2 + $0x48] sm:$0xf] }
  0x16   : > { %v627_v9 = vld [vmem:[#allocation2 + $0x4c] sm:$0x1]  ;;  %v579_v13 = vld [vmem:[#allocation2] sm:$0xe]  ;;  %v1564_v17 = vcombine.low %v619_v8, %v619_v8  ;;  %s1747_s29 = smov 8   ;;  %s1748_s30 = smov 28  }
  0x17   : > { %v679_v7 = vshll.u32 %v1517_v4, 16  ;;  %v1572_v10 = vcombine.low %v619_v8, %v627_v9  ;;  %v677_v11 = vshrl.u32 %v1517_v4, 16  ;;  %v1525_v16 = vcombine.low %v579_v13, %v571_v3  ;;  %s1751_s4 = smov 124   ;;  %s1752_s5 = smov 12  }
  0x18   : > { %v1749_v22 = vmov 1983009808   ;;  %v1750_v32 = vmov 1934713408   ;;  %vm510_vm2 = vsmask.f32 7938 }
  0x19   : > { %v681_v12 = vrot.slane %v679_v7, 1  ;;  %v1096_v15 = vshll.u32 %v1572_v10, 16  ;;  %v1094_v18 = vshrl.u32 %v1572_v10, 16  ;;  %v772_v20 = vrot.slane %v1525_v16, 1  ;;  %vm1835_vm4 = vmand %vm382_vm0, %vm510_vm2  ;;  %s1753_s6 = smov 20   ;;  %s1754_s7 = smov 32  }
  0x1a   : > { %v201_v23 = vunpack.c.l.s4 %v1749_v22  ;;  %v265_v33 = vunpack.c.l.s4 %v1750_v32  ;;  %vm516_vm3 = vsmask.f32 256  ;;  %s1755_s8 = smov 16   ;;  %vm1164_vm7 = vcmask 31744   ;;  %s1507_s17 = sshll.u32 %s1782_s13, 3 }
  0x1b   : > { %v682_v14 = vor.u32 %v681_v12, %v677_v11  ;;  %v1098_v19 = vrot.slane %v1096_v15, 1  ;;  %vm1840_vm5 = vmand %vm384_vm1, %vm516_vm3  ;;  %vm1189_vm8 = vcmask 64512   ;;  %vm1206_vm9 = vcmask 97280   ;;  %p164_p4 = scmp.lt.s32.totalorder %s1507_s17, 15 }
  0x1c   : > { %v202_v27 = vunpack.c.0.s8 %v201_v23  ;;  %v266_v40 = vunpack.c.0.s8 %v265_v33  ;;  %v536_v33 = vld [vmem:[#allocation2 + $0x24] sm:$0x1]  ;;  %vm1223_vm10 = vcmask 130048   ;;  %vm1240_vm11 = vcmask 162816  }
  0x1d   : > { %v1099_v21 = vor.u32 %v1098_v19, %v1094_v18  ;;  %vm1257_vm12 = vcmask 195584   ;;  %vm1274_vm13 = vcmask 228352   ;;  %vm1291_vm14 = vcmask 261120   ;;  %s2317_s17 = smov (!%p164_p4, %s1507_s17), 15 }
  0x1e   : > { %v205_v34 = vsub.s32 %v202_v27, %v204_v28  ;;  %v269_v51 = vsub.s32 %v266_v40, %v204_v28  ;;  %v518_v40 = vld [vmem:[#allocation2 + $0xc] sm:$0x1]  ;;  %vm1355_vm15 = vcmask 293888   ;;  %s1508_s18 = sshll.u32 %s2317_s17, 3 }
  0x84   : > { %v173_v5 = vpop.permute.xlu0 %172 }
  0x85   : > { %v1811_v6 = vadd.f32 %v173_v5, %v170_v0 }
  0x87   : > { %180 = vrot.lane.b32.xlu1 %v1811_v6, %s1738_s20  ;;  %177 = vrot.lane.b32.xlu0 %v1811_v6, %s1739_s21 }
  0x8b   : > { %183 = vrot.lane.b32.xlu1 %v1811_v6, %s1740_s22  ;;  %186 = vrot.lane.b32.xlu0 %v1811_v6, %s1741_s23  ;;  %s167_s23 = scalar_lea.vmem %s2307_s3, %s1508_s18 }
  0x8f   : > { %189 = vrot.lane.b32.xlu1 %v1811_v6, %s1742_s24  ;;  %192 = vrot.lane.b32.xlu0 %v1811_v6, %s1743_s25 }
  0x93   : > { %195 = vrot.lane.b32.xlu1 %v1811_v6, %s1744_s26  ;;  %732 = vrot.lane.b32.xlu0 %v682_v14, %s1745_s27 }
  0x97   : > { %1018 = vrot.lane.b32.xlu1 %v1564_v17, %s1746_s28  ;;  %780 = vrot.lane.b32.xlu0 %v772_v20, %s1747_s29 }
  0x9b   : > { %1114 = vrot.lane.b32.xlu1 %v1099_v21, %s1748_s30 }
  0xf9   : > { %v181_v25 = vpop.permute.xlu1 %180  ;;  %v178_v26 = vpop.permute.xlu0 %177 }
  0xfa   : > { %v198_v35 = vcombine.low %v1811_v6, %v181_v25  ;;  %v199_v43 = vcombine.high %v1811_v6, %v181_v25 }
  0xfc   : > { %v206_v44 = vrot.slane %v198_v35, %v205_v34  ;;  %v213_v56 = vrot.slane %v199_v43, %v205_v34 }
  0xfd   : > { %v184_v29 = vpop.permute.xlu1 %183  ;;  %v187_v30 = vpop.permute.xlu0 %186 }
  0xfe   : > { %v214_v31 = vcombine.low %v178_v26, %v184_v29  ;;  %v215_v38 = vcombine.high %v178_v26, %v184_v29  ;;  %v533_v29 = vld [vmem:[#allocation2 + $0x20] sm:$0xf] }
 0x100   : > { %v222_v39 = vrot.slane %v214_v31, %v205_v34  ;;  %v229_v48 = vrot.slane %v215_v38, %v205_v34 }
 0x101   : > { %v190_v36 = vpop.permute.xlu1 %189  ;;  %v193_v37 = vpop.permute.xlu0 %192 }
 0x102   : > { %v230_v41 = vcombine.low %v187_v30, %v193_v37  ;;  %v231_v42 = vcombine.high %v187_v30, %v193_v37  ;;  %v262_v49 = vcombine.low %v206_v44, %v222_v39  ;;  %v263_v50 = vcombine.high %v206_v44, %v222_v39  ;;  %v512_v39 = vld [vmem:[#allocation2 + $0x8] sm:$0xf] }
 0x103   : > { %v278_v60 = vcombine.low %v213_v56, %v229_v48  ;;  %v279_v8 = vcombine.high %v213_v56, %v229_v48 }
 0x104   : > { %v238_v52 = vrot.slane %v230_v41, %v205_v34  ;;  %v245_v53 = vrot.slane %v231_v42, %v205_v34  ;;  %v277_v61 = vrot.slane %v263_v50, %v269_v51  ;;  %v270_v63 = vrot.slane %v262_v49, %v269_v51 }
 0x105   : > { %v196_v45 = vpop.permute.xlu1 %195  ;;  %v286_v4 = vrot.slane %v278_v60, %v269_v51  ;;  %v293_v12 = vrot.slane %v279_v8, %v269_v51  ;;  %v1828_v16 = vpop.permute.xlu0 %732 }
 0x106   : > { %v246_v46 = vcombine.low %v190_v36, %v196_v45  ;;  %v247_v47 = vcombine.high %v190_v36, %v196_v45 }
 0x108   : > { %v254_v54 = vrot.slane %v246_v46, %v205_v34  ;;  %v261_v55 = vrot.slane %v247_v47, %v205_v34 }
 0x109   : > { %v1826_v15 = vpop.permute.xlu1 %1018  ;;  %v1832_v18 = vpop.permute.xlu0 %780 }
 0x10a   : > { %v294_v57 = vcombine.low %v238_v52, %v254_v54  ;;  %v295_v58 = vcombine.high %v238_v52, %v254_v54  ;;  %v310_v59 = vcombine.low %v245_v53, %v261_v55  ;;  %v311_v5 = vcombine.high %v245_v53, %v261_v55 }
 0x10c   : > { %v309_v62 = vrot.slane %v295_v58, %v269_v51  ;;  %v302_v0 = vrot.slane %v294_v57, %v269_v51  ;;  %v318_v3 = vrot.slane %v310_v59, %v269_v51  ;;  %v325_v11 = vrot.slane %v311_v5, %v269_v51  ;;  %v521_v57 = vld [vmem:[#allocation2 + $0x10] sm:$0xf] }
 0x10d   : > { %v1830_v17 = vpop.permute.xlu1 %1114 }
 0x10e   : > { %v329_v1 = vcombine.high %v277_v61, %v309_v62  ;;  %v326_v2 = vcombine.low %v270_v63, %v302_v0  ;;  %v327_v6 = vcombine.high %v270_v63, %v302_v0  ;;  %v330_v7 = vcombine.low %v286_v4, %v318_v3  ;;  %2308 = vst [vmem:[#allocation3_spill] sm:$0xff] %v1830_v17  ;;  %v524_v0 = vld [vmem:[#allocation2 + $0x14] sm:$0x1] }
 0x10f   : > { %v331_v9 = vcombine.high %v286_v4, %v318_v3  ;;  %v328_v10 = vcombine.low %v277_v61, %v309_v62  ;;  %v333_v13 = vcombine.high %v293_v12, %v325_v11  ;;  %v332_v14 = vcombine.low %v293_v12, %v325_v11 }
 0x110   : > { %348 = vrot.lane.b32.xlu1 %v329_v1, %s1751_s4  ;;  %342 = vrot.lane.b32.xlu0 %v326_v2, %s1751_s4 }
 0x114   : > { %344 = vrot.lane.b32.xlu1 %v327_v6, %s1751_s4  ;;  %350 = vrot.lane.b32.xlu0 %v330_v7, %s1751_s4 }
 0x118   : > { %352 = vrot.lane.b32.xlu1 %v331_v9, %s1751_s4  ;;  %346 = vrot.lane.b32.xlu0 %v328_v10, %s1751_s4 }
 0x11c   : > { %356 = vrot.lane.b32.xlu1 %v333_v13, %s1751_s4  ;;  %354 = vrot.lane.b32.xlu0 %v332_v14, %s1751_s4 }
 0x182   : > { %v349_v19 = vpop.permute.xlu1 %348  ;;  %v343_v20 = vpop.permute.xlu0 %342 }
 0x183   : > { %v369_v21 = vadd.f32 %v349_v19, %v329_v1  ;;  %v366_v22 = vadd.f32 %v343_v20, %v326_v2  ;;  %v539_v1 = vld [vmem:[#allocation2 + $0x28] sm:$0xf]  ;;  %v542_v2 = vld [vmem:[#allocation2 + $0x2c] sm:$0x1] }
 0x185   : > { %v1598_v23 = vpack.c.bf16 %v369_v21, %v369_v21  ;;  %v1595_v24 = vpack.c.bf16 %v366_v22, %v366_v22 }
 0x186   : > { %v345_v25 = vpop.permute.xlu1 %344  ;;  %v351_v26 = vpop.permute.xlu0 %350 }
 0x187   : > { %v453_v27 = vshrl.u32 %v1598_v23, 16  ;;  %v429_v28 = vshrl.u32 %v1595_v24, 16  ;;  %v367_v30 = vadd.f32 %v345_v25, %v327_v6  ;;  %v370_v31 = vadd.f32 %v351_v26, %v330_v7  ;;  %v527_v26 = vld [vmem:[#allocation2 + $0x18] sm:$0xf] }
 0x188   : > { %v456_v35 = vshll.u32 %v1598_v23, 16  ;;  %v432_v37 = vshll.u32 %v1595_v24, 16  ;;  %v545_v23 = vld [vmem:[#allocation2 + $0x30] sm:$0xf]  ;;  %v548_v24 = vld [vmem:[#allocation2 + $0x34] sm:$0x1] }
 0x189   : > { %v455_v34 = vrot.slane %v453_v27, 7  ;;  %v431_v36 = vrot.slane %v429_v28, 7  ;;  %v1596_v41 = vpack.c.bf16 %v367_v30, %v367_v30  ;;  %v1599_v42 = vpack.c.bf16 %v370_v31, %v370_v31  ;;  %v530_v27 = vld [vmem:[#allocation2 + $0x1c] sm:$0x1] }
 0x18a   : > { %v353_v43 = vpop.permute.xlu1 %352  ;;  %v347_v44 = vpop.permute.xlu0 %346 }
 0x18b   : > { %v458_v45 = vor.u32 %v456_v35, %v455_v34  ;;  %v459_v46 = vrot.slane %v455_v34, 4  ;;  %v434_v47 = vor.u32 %v432_v37, %v431_v36  ;;  %v435_v48 = vrot.slane %v431_v36, 4  ;;  %v557_v34 = vld [vmem:[#allocation2 + $0x40] sm:$0xf]  ;;  %v560_v37 = vld [vmem:[#allocation2 + $0x44] sm:$0x1] }
 0x18c   : > { %v437_v49 = vshrl.u32 %v1596_v41, 16  ;;  %v440_v50 = vshll.u32 %v1596_v41, 16  ;;  %v461_v51 = vshrl.u32 %v1599_v42, 16  ;;  %v464_v52 = vshll.u32 %v1599_v42, 16 }
 0x18d   : > { %v534_v53 = vsel %vm1835_vm4, %v458_v45, %v533_v29  ;;  %v537_v54 = vsel %vm1840_vm5, %v459_v46, %v536_v33  ;;  %v513_v55 = vsel %vm1835_vm4, %v434_v47, %v512_v39  ;;  %v519_v56 = vsel %vm1840_vm5, %v435_v48, %v518_v40  ;;  %v551_v47 = vld [vmem:[#allocation2 + $0x38] sm:$0xf]  ;;  %v554_v48 = vld [vmem:[#allocation2 + $0x3c] sm:$0x1] }
 0x18e   : > { %535 = vst [vmem:[#allocation2 + $0x20] sm:$0xf] %v534_v53  ;;  %538 = vst [vmem:[#allocation2 + $0x24] sm:$0x1] %v537_v54  ;;  %v439_v58 = vrot.slane %v437_v49, 7  ;;  %v463_v59 = vrot.slane %v461_v51, 7  ;;  %v371_v60 = vadd.f32 %v353_v43, %v331_v9  ;;  %v368_v61 = vadd.f32 %v347_v44, %v328_v10  ;;  %v357_v62 = vpop.permute.xlu1 %356  ;;  %v355_v63 = vpop.permute.xlu0 %354 }
 0x18f   : > { %514 = vst [vmem:[#allocation2 + $0x8] sm:$0xf] %v513_v55  ;;  %520 = vst [vmem:[#allocation2 + $0xc] sm:$0x1] %v519_v56  ;;  %v373_v3 = vadd.f32 %v357_v62, %v333_v13  ;;  %v372_v4 = vadd.f32 %v355_v63, %v332_v14 }
 0x190   : > { %v442_v5 = vor.u32 %v440_v50, %v439_v58  ;;  %v443_v6 = vrot.slane %v439_v58, 4  ;;  %v466_v7 = vor.u32 %v464_v52, %v463_v59  ;;  %v467_v8 = vrot.slane %v463_v59, 4 }
 0x191   : > { %v1600_v11 = vpack.c.bf16 %v371_v60, %v371_v60  ;;  %v1597_v12 = vpack.c.bf16 %v368_v61, %v368_v61  ;;  %v1602_v19 = vpack.c.bf16 %v373_v3, %v373_v3  ;;  %v1601_v20 = vpack.c.bf16 %v372_v4, %v372_v4 }
 0x192   : > { %v522_v21 = vsel %vm1835_vm4, %v442_v5, %v521_v57  ;;  %v525_v9 = vsel %vm1840_vm5, %v443_v6, %v524_v0  ;;  %v540_v10 = vsel %vm1835_vm4, %v466_v7, %v539_v1  ;;  %v543_v13 = vsel %vm1840_vm5, %v467_v8, %v542_v2 }
 0x193   : > { %523 = vst [vmem:[#allocation2 + $0x10] sm:$0xf] %v522_v21  ;;  %526 = vst [vmem:[#allocation2 + $0x14] sm:$0x1] %v525_v9  ;;  %v469_v14 = vshrl.u32 %v1600_v11, 16  ;;  %v445_v22 = vshrl.u32 %v1597_v12, 16 }
 0x194   : > { %541 = vst [vmem:[#allocation2 + $0x28] sm:$0xf] %v540_v10  ;;  %544 = vst [vmem:[#allocation2 + $0x2c] sm:$0x1] %v543_v13  ;;  %v472_v25 = vshll.u32 %v1600_v11, 16  ;;  %v485_v28 = vshrl.u32 %v1602_v19, 16 }
 0x195   : > { %v477_v29 = vshrl.u32 %v1601_v20, 16  ;;  %v471_v30 = vrot.slane %v469_v14, 7  ;;  %v447_v31 = vrot.slane %v445_v22, 7  ;;  %v448_v33 = vshll.u32 %v1597_v12, 16  ;;  %v1901_v4 = vld [vmem:[#allocation2 + $0x20] sm:$0xf] }
 0x196   : > { %v488_v35 = vshll.u32 %v1602_v19, 16  ;;  %v1860_v36 = vld [vmem:[#allocation2 + $0x8] sm:$0xf]  ;;  %v487_v39 = vrot.slane %v485_v28, 7  ;;  %v480_v41 = vshll.u32 %v1601_v20, 16  ;;  %v1536_v6 = vcombine.low %v1901_v4, %v1901_v4 }
 0x197   : > { %v479_v40 = vrot.slane %v477_v29, 7  ;;  %v1533_v42 = vcombine.low %v1860_v36, %v1860_v36  ;;  %v474_v43 = vor.u32 %v472_v25, %v471_v30  ;;  %v475_v44 = vrot.slane %v471_v30, 4  ;;  %v1931_v13 = vld [vmem:[#allocation2 + $0x20] sm:$0xf]  ;;  %v1941_v25 = vld [vmem:[#allocation2 + $0x24] sm:$0x1] }
 0x198   : > { %v450_v45 = vor.u32 %v448_v33, %v447_v31  ;;  %v451_v46 = vrot.slane %v447_v31, 4  ;;  %v490_v49 = vor.u32 %v488_v35, %v487_v39  ;;  %v491_v50 = vrot.slane %v487_v39, 4  ;;  %v583_v28 = vld [vmem:[#allocation2 + $0x20] sm:$0xe] }
 0x199   : > { %v482_v51 = vor.u32 %v480_v41, %v479_v40  ;;  %v483_v52 = vrot.slane %v479_v40, 4  ;;  %820 = vrot.lane.b32.xlu0 %v1533_v42, %s1752_s5  ;;  %v546_v53 = vsel %vm1835_vm4, %v474_v43, %v545_v23  ;;  %v549_v54 = vsel %vm1840_vm5, %v475_v44, %v548_v24  ;;  %v1939_v23 = vld [vmem:[#allocation2 + $0xc] sm:$0x1]  ;;  %v580_v24 = vld [vmem:[#allocation2 + $0x8] sm:$0xe] }
 0x19a   : > { %v528_v55 = vsel %vm1835_vm4, %v450_v45, %v527_v26  ;;  %v531_v56 = vsel %vm1840_vm5, %v451_v46, %v530_v27  ;;  %547 = vst [vmem:[#allocation2 + $0x30] sm:$0xf] %v546_v53  ;;  %550 = vst [vmem:[#allocation2 + $0x34] sm:$0x1] %v549_v54  ;;  %v558_v57 = vsel %vm1835_vm4, %v490_v49, %v557_v34  ;;  %v1881_v61 = vld [vmem:[#allocation2 + $0x10] sm:$0xf] }
 0x19b   : > { %529 = vst [vmem:[#allocation2 + $0x18] sm:$0xf] %v528_v55  ;;  %532 = vst [vmem:[#allocation2 + $0x1c] sm:$0x1] %v531_v56  ;;  %v561_v58 = vsel %vm1840_vm5, %v491_v50, %v560_v37  ;;  %v552_v59 = vsel %vm1835_vm4, %v482_v51, %v551_v47  ;;  %v555_v60 = vsel %vm1840_vm5, %v483_v52, %v554_v48  ;;  %v1883_v62 = vld [vmem:[#allocation2 + $0x28] sm:$0xf] }
 0x19c   : > { %559 = vst [vmem:[#allocation2 + $0x40] sm:$0xf] %v558_v57  ;;  %562 = vst [vmem:[#allocation2 + $0x44] sm:$0x1] %v561_v58  ;;  %v1534_v63 = vcombine.low %v1881_v61, %v1881_v61  ;;  %v1537_v0 = vcombine.low %v1883_v62, %v1883_v62  ;;  %v1911_v8 = vld [vmem:[#allocation2 + $0x10] sm:$0xf]  ;;  %v1559_v22 = vcombine.low %v1931_v13, %v1931_v13 }
 0x19d   : > { %553 = vst [vmem:[#allocation2 + $0x38] sm:$0xf] %v552_v59  ;;  %556 = vst [vmem:[#allocation2 + $0x3c] sm:$0x1] %v555_v60  ;;  %v1557_v12 = vcombine.low %v1911_v8, %v1911_v8  ;;  %v1943_v26 = vld [vmem:[#allocation2 + $0x28] sm:$0xf]  ;;  %v1526_v31 = vcombine.low %v580_v24, %v1939_v23  ;;  %v1529_v33 = vcombine.low %v583_v28, %v1941_v25 }
 0x19e   : > { %822 = vrot.lane.b32.xlu1 %v1534_v63, %s1752_s5  ;;  %828 = vrot.lane.b32.xlu0 %v1537_v0, %s1752_s5  ;;  %v1560_v29 = vcombine.low %v1943_v26, %v1943_v26  ;;  %v1955_v34 = vld [vmem:[#allocation2 + $0x2c] sm:$0x1]  ;;  %v584_v35 = vld [vmem:[#allocation2 + $0x28] sm:$0xe]  ;;  %v1957_v37 = vld [vmem:[#allocation2 + $0x14] sm:$0x1] }
 0x19f   : > { %v581_v39 = vld [vmem:[#allocation2 + $0x10] sm:$0xe]  ;;  %v773_v40 = vrot.slane %v1526_v31, 1  ;;  %v776_v41 = vrot.slane %v1529_v33, 1  ;;  %v1530_v42 = vcombine.low %v584_v35, %v1955_v34  ;;  %v1971_v52 = vld [vmem:[#allocation2 + $0xc] sm:$0x1] }
 0x1a0   : > { %v1527_v43 = vcombine.low %v581_v39, %v1957_v37  ;;  %v603_v53 = vld [vmem:[#allocation2 + $0x8] sm:$0xe]  ;;  %v1979_v60 = vld [vmem:[#allocation2 + $0x2c] sm:$0x1]  ;;  %v1981_v0 = vld [vmem:[#allocation2 + $0x14] sm:$0x1] }
 0x1a1   : > { %v1891_v32 = vld [vmem:[#allocation2 + $0x30] sm:$0xf]  ;;  %v1965_v46 = vld [vmem:[#allocation2 + $0x34] sm:$0x1]  ;;  %v777_v48 = vrot.slane %v1530_v42, 1  ;;  %v1549_v58 = vcombine.low %v603_v53, %v1971_v52 }
 0x1a2   : > { %v1893_v38 = vld [vmem:[#allocation2 + $0x18] sm:$0xf]  ;;  %v1538_v1 = vcombine.low %v1891_v32, %v1891_v32  ;;  %v1921_v20 = vld [vmem:[#allocation2 + $0x30] sm:$0xf]  ;;  %v1963_v44 = vld [vmem:[#allocation2 + $0x1c] sm:$0x1] }
 0x1a3   : > { %v1535_v2 = vcombine.low %v1893_v38, %v1893_v38  ;;  %v1909_v7 = vld [vmem:[#allocation2 + $0x40] sm:$0xf]  ;;  %v1919_v19 = vld [vmem:[#allocation2 + $0x18] sm:$0xf]  ;;  %v1561_v9 = vcombine.low %v1921_v20, %v1921_v20  ;;  %v585_v47 = vld [vmem:[#allocation2 + $0x30] sm:$0xe] }
 0x1a4   : > { %v1899_v3 = vld [vmem:[#allocation2 + $0x38] sm:$0xf]  ;;  %830 = vrot.lane.b32.xlu1 %v1538_v1, %s1752_s5  ;;  %v1540_v11 = vcombine.low %v1909_v7, %v1909_v7  ;;  %v1558_v21 = vcombine.low %v1919_v19, %v1919_v19  ;;  %v1945_v27 = vld [vmem:[#allocation2 + $0x40] sm:$0xf]  ;;  %v774_v49 = vrot.slane %v1527_v43, 1  ;;  %v1531_v51 = vcombine.low %v585_v47, %v1965_v46 }
 0x1a5   : > { %824 = vrot.lane.b32.xlu0 %v1535_v2, %s1752_s5  ;;  %v1539_v5 = vcombine.low %v1899_v3, %v1899_v3  ;;  %v1929_v10 = vld [vmem:[#allocation2 + $0x38] sm:$0xf]  ;;  %v1563_v30 = vcombine.low %v1945_v27, %v1945_v27  ;;  %v1973_v54 = vld [vmem:[#allocation2 + $0x3c] sm:$0x1]  ;;  %v607_v63 = vld [vmem:[#allocation2 + $0x28] sm:$0xe] }
 0x1a6   : > { %v1562_v14 = vcombine.low %v1929_v10, %v1929_v10  ;;  %v582_v45 = vld [vmem:[#allocation2 + $0x18] sm:$0xe]  ;;  %v778_v57 = vrot.slane %v1531_v51, 1  ;;  %v604_v1 = vld [vmem:[#allocation2 + $0x10] sm:$0xe]  ;;  %v956_v2 = vrot.slane %v1549_v58, 1 }
 0x1a7   : > { %v1528_v50 = vcombine.low %v582_v45, %v1963_v44  ;;  %v586_v55 = vld [vmem:[#allocation2 + $0x38] sm:$0xe]  ;;  %v1997_v31 = vld [vmem:[#allocation2 + $0x3c] sm:$0x1]  ;;  %v606_v35 = vld [vmem:[#allocation2 + $0x20] sm:$0xe] }
 0x1a8   : > { %826 = vrot.lane.b32.xlu1 %v1536_v6, %s1752_s5  ;;  %v1532_v59 = vcombine.low %v586_v55, %v1973_v54  ;;  %v1553_v6 = vcombine.low %v607_v63, %v1979_v60  ;;  %v609_v33 = vld [vmem:[#allocation2 + $0x38] sm:$0xe]  ;;  %v2003_v43 = vld [vmem:[#allocation2 + $0x14] sm:$0x1]  ;;  %v628_v45 = vld [vmem:[#allocation2 + $0x10] sm:$0xe] }
 0x1a9   : > { %832 = vrot.lane.b32.xlu0 %v1539_v5, %s1752_s5  ;;  %v775_v56 = vrot.slane %v1528_v50, 1  ;;  %v2005_v47 = vld [vmem:[#allocation2 + $0x44] sm:$0x1]  ;;  %v1573_v53 = vcombine.low %v628_v45, %v2003_v43  ;;  %v2015_v58 = vld [vmem:[#allocation2 + $0x1c] sm:$0x1] }
 0x1aa   : > { %v779_v5 = vrot.slane %v1532_v59, 1  ;;  %v629_v59 = vld [vmem:[#allocation2 + $0x18] sm:$0xe]  ;;  %v2019_v63 = vld [vmem:[#allocation2 + $0x8] sm:$0xf] }
 0x1ac   : > { %834 = vrot.lane.b32.xlu1 %v1540_v11, %s1752_s5  ;;  %v1550_v11 = vcombine.low %v604_v1, %v1981_v0 }
 0x1ad   : > { %1004 = vrot.lane.b32.xlu0 %v1557_v12, %s1746_s28  ;;  %v1987_v12 = vld [vmem:[#allocation2 + $0x1c] sm:$0x1] }
 0x1ae   : > { %v957_v24 = vrot.slane %v1550_v11, 1  ;;  %v1574_v11 = vcombine.low %v629_v59, %v2015_v58 }
 0x1b0   : > { %1006 = vrot.lane.b32.xlu1 %v1558_v21, %s1746_s28  ;;  %v605_v21 = vld [vmem:[#allocation2 + $0x18] sm:$0xe] }
 0x1b1   : > { %1012 = vrot.lane.b32.xlu0 %v1561_v9, %s1746_s28  ;;  %v1989_v9 = vld [vmem:[#allocation2 + $0x34] sm:$0x1]  ;;  %v1551_v28 = vcombine.low %v605_v21, %v1987_v12  ;;  %v2025_v21 = vld [vmem:[#allocation2 + $0x24] sm:$0x1] }
 0x1b3   : > { %v958_v39 = vrot.slane %v1551_v28, 1  ;;  %v633_v28 = vld [vmem:[#allocation2 + $0x38] sm:$0xe] }
 0x1b4   : > { %1014 = vrot.lane.b32.xlu1 %v1562_v14, %s1746_s28  ;;  %v608_v14 = vld [vmem:[#allocation2 + $0x30] sm:$0xe] }
 0x1b5   : > { %1008 = vrot.lane.b32.xlu0 %v1559_v22, %s1746_s28  ;;  %v960_v22 = vrot.slane %v1553_v6, 1 }
 0x1b8   : > { %1010 = vrot.lane.b32.xlu1 %v1560_v29, %s1746_s28  ;;  %v1554_v29 = vcombine.low %v608_v14, %v1989_v9  ;;  %v630_v14 = vld [vmem:[#allocation2 + $0x20] sm:$0xe] }
 0x1b9   : > { %1016 = vrot.lane.b32.xlu0 %v1563_v30, %s1746_s28  ;;  %v1995_v30 = vld [vmem:[#allocation2 + $0x24] sm:$0x1] }
 0x1ba   : > { %v1552_v42 = vcombine.low %v606_v35, %v1995_v30  ;;  %v2036_v35 = vld [vmem:[#allocation2 + $0x28] sm:$0xf] }
 0x1bc   : > { %782 = vrot.lane.b32.xlu1 %v773_v40, %s1747_s29  ;;  %v961_v40 = vrot.slane %v1554_v29, 1  ;;  %v959_v51 = vrot.slane %v1552_v42, 1  ;;  %v1575_v29 = vcombine.low %v630_v14, %v2025_v21  ;;  %v1141_v42 = vrot.slane %v1574_v11, 1 }
 0x1bd   : > { %788 = vrot.lane.b32.xlu0 %v776_v41, %s1747_s29  ;;  %v1555_v41 = vcombine.low %v609_v33, %v1997_v31 }
 0x1bf   : > { %v962_v50 = vrot.slane %v1555_v41, 1 }
 0x1c0   : > { %790 = vrot.lane.b32.xlu1 %v777_v48, %s1747_s29  ;;  %v610_v48 = vld [vmem:[#allocation2 + $0x40] sm:$0xe] }
 0x1c1   : > { %784 = vrot.lane.b32.xlu0 %v774_v49, %s1747_s29  ;;  %v2009_v49 = vld [vmem:[#allocation2 + $0x20] sm:$0xf]  ;;  %v1556_v55 = vcombine.low %v610_v48, %v2005_v47  ;;  %v2043_v48 = vld [vmem:[#allocation2 + $0x2c] sm:$0x1] }
 0x1c2   : > { %v1521_v1 = vcombine.low %v2009_v49, %v1941_v25  ;;  %v1518_v25 = vcombine.low %v2019_v63, %v1939_v23  ;;  %v1522_v23 = vcombine.low %v2036_v35, %v1955_v34 }
 0x1c4   : > { %786 = vrot.lane.b32.xlu1 %v775_v56, %s1747_s29  ;;  %v2013_v56 = vld [vmem:[#allocation2 + $0x34] sm:$0x1]  ;;  %v707_v33 = vshll.u32 %v1521_v1, 16 }
 0x1c5   : > { %792 = vrot.lane.b32.xlu0 %v778_v57, %s1747_s29  ;;  %v632_v57 = vld [vmem:[#allocation2 + $0x30] sm:$0xe] }
 0x1c6   : > { %v1577_v6 = vcombine.low %v632_v57, %v2013_v56 }
 0x1c8   : > { %794 = vrot.lane.b32.xlu1 %v779_v5, %s1747_s29  ;;  %v963_v5 = vrot.slane %v1556_v55, 1  ;;  %v1144_v41 = vrot.slane %v1577_v6, 1  ;;  %v2051_v55 = vld [vmem:[#allocation2 + $0x18] sm:$0xf]  ;;  %v705_v6 = vshrl.u32 %v1521_v1, 16 }
 0x1c9   : > { %964 = vrot.lane.b32.xlu0 %v956_v2, %s1753_s6  ;;  %v1140_v2 = vrot.slane %v1573_v53, 1  ;;  %v709_v53 = vrot.slane %v707_v33, 1  ;;  %v1520_v34 = vcombine.low %v2051_v55, %v1963_v44 }
 0x1cb   : > { %v710_v11 = vor.u32 %v709_v53, %v705_v6 }
 0x1cc   : > { %966 = vrot.lane.b32.xlu1 %v957_v24, %s1753_s6  ;;  %v2029_v24 = vld [vmem:[#allocation2 + $0x3c] sm:$0x1] }
 0x1cd   : > { %972 = vrot.lane.b32.xlu0 %v960_v22, %s1753_s6  ;;  %v2027_v22 = vld [vmem:[#allocation2 + $0x10] sm:$0xf]  ;;  %v1578_v45 = vcombine.low %v633_v28, %v2029_v24  ;;  %v2060_v28 = vld [vmem:[#allocation2 + $0x38] sm:$0xf] }
 0x1ce   : > { %v1524_v44 = vcombine.low %v2060_v28, %v1973_v54  ;;  %v1543_v54 = vcombine.low %v1893_v38, %v1987_v12 }
 0x1cf   : > { %v1145_v57 = vrot.slane %v1578_v45, 1  ;;  %v684_v45 = vshrl.u32 %v1518_v25, 16 }
 0x1d0   : > { %974 = vrot.lane.b32.xlu1 %v961_v40, %s1753_s6  ;;  %v2040_v40 = vld [vmem:[#allocation2 + $0x30] sm:$0xf]  ;;  %v877_v38 = vshll.u32 %v1543_v54, 16 }
 0x1d1   : > { %968 = vrot.lane.b32.xlu0 %v958_v39, %s1753_s6  ;;  %v1519_v39 = vcombine.low %v2027_v22, %v1957_v37  ;;  %v1142_v37 = vrot.slane %v1575_v29, 1 }
 0x1d3   : > { %v691_v1 = vshrl.u32 %v1519_v39, 16 }
 0x1d4   : > { %970 = vrot.lane.b32.xlu1 %v959_v51, %s1753_s6  ;;  %v1523_v51 = vcombine.low %v2040_v40, %v1965_v46  ;;  %v1541_v46 = vcombine.low %v1860_v36, %v1971_v52  ;;  %v1545_v36 = vcombine.low %v1883_v62, %v1979_v60 }
 0x1d5   : > { %976 = vrot.lane.b32.xlu0 %v962_v50, %s1753_s6  ;;  %v631_v50 = vld [vmem:[#allocation2 + $0x28] sm:$0xe] }
 0x1d6   : > { %v1576_v59 = vcombine.low %v631_v50, %v2043_v48  ;;  %v721_v14 = vshll.u32 %v1523_v51, 16  ;;  %v863_v50 = vshll.u32 %v1541_v46, 16  ;;  %v891_v62 = vshll.u32 %v1545_v36, 16 }
 0x1d8   : > { %978 = vrot.lane.b32.xlu1 %v963_v5, %s1753_s6  ;;  %v686_v5 = vshll.u32 %v1518_v25, 16  ;;  %v1143_v29 = vrot.slane %v1576_v59, 1  ;;  %v723_v52 = vrot.slane %v721_v14, 1  ;;  %v700_v59 = vshll.u32 %v1520_v34, 16 }
 0x1d9   : > { %1148 = vrot.lane.b32.xlu0 %v1140_v2, %s1754_s7  ;;  %v693_v2 = vshll.u32 %v1519_v39, 16  ;;  %v1542_v25 = vcombine.low %v1881_v61, %v1981_v0  ;;  %v865_v6 = vrot.slane %v863_v50, 1  ;;  %v728_v14 = vshll.u32 %v1524_v44, 16 }
 0x1da   : > { %v1547_v61 = vcombine.low %v1899_v3, %v1997_v31  ;;  %v893_v0 = vrot.slane %v891_v62, 1 }
 0x1db   : > { %v695_v33 = vrot.slane %v693_v2, 1  ;;  %v719_v2 = vshrl.u32 %v1523_v51, 16  ;;  %v861_v51 = vshrl.u32 %v1541_v46, 16  ;;  %v726_v46 = vshrl.u32 %v1524_v44, 16 }
 0x1dc   : > { %1150 = vrot.lane.b32.xlu1 %v1141_v42, %s1754_s7  ;;  %v714_v42 = vshll.u32 %v1522_v23, 16  ;;  %v1548_v44 = vcombine.low %v1909_v7, %v2005_v47  ;;  %v1566_v7 = vcombine.low %v1919_v19, %v2015_v58  ;;  %v1723_v19 = vld [vmem:[%s2305_s1 + $0x10] ss:$0 sps:$4 sm:$0x33]  }
 0x1dd   : > { %1156 = vrot.lane.b32.xlu0 %v1144_v41, %s1754_s7  ;;  %v688_v41 = vrot.slane %v686_v5, 1  ;;  %v712_v5 = vshrl.u32 %v1522_v23, 16  ;;  %v724_v39 = vor.u32 %v723_v52, %v719_v2  ;;  %v1546_v23 = vcombine.low %v1891_v32, %v1989_v9  ;;  %1630 = vmatprep.subr.msk.bf16.mxu0 %vm1368_vm6, %v1723_v19 }
 0x1de   : > { %v866_v12 = vor.u32 %v865_v6, %v861_v51  ;;  %v1565_v32 = vcombine.low %v1911_v8, %v2003_v43  ;;  %v879_v9 = vrot.slane %v877_v38, 1  ;;  %v905_v52 = vshll.u32 %v1547_v61, 16  ;;  %1631 = vmatprep.subr.msk.bf16.mxu1 %vm1368_vm6, %v1723_v19  ;;  %v1724_v38 = vld [vmem:[%s2305_s1 + $0x8] sm:$0xff]  }
 0x1df   : > { %v689_v53 = vor.u32 %v688_v41, %v684_v45  ;;  %v730_v41 = vrot.slane %v728_v14, 1  ;;  %v898_v50 = vshll.u32 %v1546_v23, 16  ;;  %v903_v2 = vshrl.u32 %v1547_v61, 16 }
 0x1e0   : > { %1158 = vrot.lane.b32.xlu1 %v1145_v57, %s1754_s7  ;;  %v716_v57 = vrot.slane %v714_v42, 1  ;;  %v870_v42 = vshll.u32 %v1542_v25, 16  ;;  %v1047_v8 = vshll.u32 %v1565_v32, 16  ;;  %v1045_v6 = vshrl.u32 %v1565_v32, 16 }
 0x1e1   : > { %1152 = vrot.lane.b32.xlu0 %v1142_v37, %s1754_s7  ;;  %v696_v37 = vor.u32 %v695_v33, %v691_v1  ;;  %v889_v1 = vshrl.u32 %v1545_v36, 16  ;;  %v731_v31 = vor.u32 %v730_v41, %v726_v46  ;;  %v868_v36 = vshrl.u32 %v1542_v25, 16 }
 0x1e2   : > { %v717_v60 = vor.u32 %v716_v57, %v712_v5  ;;  %v872_v45 = vrot.slane %v870_v42, 1  ;;  %v900_v57 = vrot.slane %v898_v50, 1  ;;  %v896_v5 = vshrl.u32 %v1546_v23, 16 }
 0x1e3   : > { %v894_v3 = vor.u32 %v893_v0, %v889_v1  ;;  %v1049_v47 = vrot.slane %v1047_v8, 1  ;;  %v1054_v61 = vshll.u32 %v1566_v7, 16  ;;  %v1052_v32 = vshrl.u32 %v1566_v7, 16 }
 0x1e4   : > { %1154 = vrot.lane.b32.xlu1 %v1143_v29, %s1754_s7  ;;  %v698_v29 = vshrl.u32 %v1520_v34, 16  ;;  %v1544_v34 = vcombine.low %v1901_v4, %v1995_v30  ;;  %v1569_v4 = vcombine.low %v1921_v20, %v2013_v56  ;;  %v873_v43 = vor.u32 %v872_v45, %v868_v36 }
 0x1e5   : > { %740 = vrot.lane.b32.xlu0 %v710_v11, %s1745_s27  ;;  %v702_v11 = vrot.slane %v700_v59, 1  ;;  %v1567_v20 = vcombine.low %v1931_v13, %v2025_v21  ;;  %v1570_v13 = vcombine.low %v1929_v10, %v2029_v24  ;;  %v1050_v58 = vor.u32 %v1049_v47, %v1045_v6 }
 0x1e6   : > { %v884_v59 = vshll.u32 %v1544_v34, 16  ;;  %v1075_v56 = vshll.u32 %v1569_v4, 16  ;;  %v882_v14 = vshrl.u32 %v1544_v34, 16  ;;  %v1073_v0 = vshrl.u32 %v1569_v4, 16  ;;  %v635_v4 = vld [vmem:[#allocation2 + $0x48] sm:$0xe] }
 0x1e7   : > { %v703_v33 = vor.u32 %v702_v11, %v698_v29  ;;  %v1061_v51 = vshll.u32 %v1567_v20, 16  ;;  %v910_v10 = vshrl.u32 %v1548_v44, 16  ;;  %v1568_v24 = vcombine.low %v1943_v26, %v2043_v48 }
 0x1e8   : > { %734 = vrot.lane.b32.xlu1 %v689_v53, %s1745_s27  ;;  %v907_v53 = vrot.slane %v905_v52, 1  ;;  %v886_v62 = vrot.slane %v884_v59, 1  ;;  %v1077_v21 = vrot.slane %v1075_v56, 1  ;;  %v1056_v42 = vrot.slane %v1054_v61, 1 }
 0x1e9   : > { %736 = vrot.lane.b32.xlu0 %v696_v37, %s1745_s27  ;;  %v875_v37 = vshrl.u32 %v1543_v54, 16  ;;  %v2094_v54 = vld [vmem:[#allocation2 + $0x44] sm:$0x1]  ;;  %v1082_v46 = vshll.u32 %v1570_v13, 16  ;;  %v1059_v34 = vshrl.u32 %v1567_v20, 16  ;;  %v1068_v50 = vshll.u32 %v1568_v24, 16 }
 0x1ea   : > { %v908_v25 = vor.u32 %v907_v53, %v903_v2  ;;  %v1571_v11 = vcombine.low %v1945_v27, %v2094_v54  ;;  %v887_v29 = vor.u32 %v886_v62, %v882_v14  ;;  %v1370_v27 = vsel %vm1368_vm6, %v1723_v19, 0 }
 0x1eb   : > { %v880_v30 = vor.u32 %v879_v9, %v875_v37  ;;  %1611 = vmatpush3.bf16.msra.mxu0 %v1370_v27  ;;  %1627 = vmatpush3.bf16.msra.mxu1 %v1370_v27  ;;  %v1725_v9 = vld [vmem:[%s2305_s1] sm:$0xff]   ;;  %v1084_v52 = vrot.slane %v1082_v46, 1  ;;  %v1066_v2 = vshrl.u32 %v1568_v24, 16 }
 0x1ec   : > { %742 = vrot.lane.b32.xlu1 %v717_v60, %s1745_s27  ;;  %v912_v60 = vshll.u32 %v1548_v44, 16  ;;  %1612 = vmatprep.subr.bf16.mxu0 %v1724_v38  ;;  %v1089_v1 = vshll.u32 %v1571_v11, 16  ;;  %v634_v37 = vld [vmem:[#allocation2 + $0x40] sm:$0xe]  ;;  %v1087_v36 = vshrl.u32 %v1571_v11, 16  ;;  %v1080_v44 = vshrl.u32 %v1570_v13, 16 }
 0x1ed   : > { %744 = vrot.lane.b32.xlu0 %v724_v39, %s1745_s27  ;;  %v901_v39 = vor.u32 %v900_v57, %v896_v5  ;;  %1625 = vmatprep.subr.bf16.mxu1 %v1724_v38  ;;  %v1579_v53 = vcombine.low %v634_v37, %v2094_v54  ;;  %v1070_v57 = vrot.slane %v1068_v50, 1  ;;  %v1727_v5 = vld [vmem:[#allocation2 + $0x4c] sm:$0x1] }
 0x1ee   : > { %v914_v23 = vrot.slane %v912_v60, 1  ;;  %v1091_v45 = vrot.slane %v1089_v1, 1  ;;  %v1085_v8 = vor.u32 %v1084_v52, %v1080_v44  ;;  %v1580_v7 = vcombine.low %v635_v4, %v1727_v5 }
 0x1ef   : > { %1613 = vmatpush3.bf16.msra.mxu0 %v1724_v38  ;;  %1628 = vmatpush3.bf16.msra.mxu1 %v1724_v38  ;;  %v1071_v20 = vor.u32 %v1070_v57, %v1066_v2 }
 0x1f0   : > { %738 = vrot.lane.b32.xlu1 %v703_v33, %s1745_s27  ;;  %v1063_v33 = vrot.slane %v1061_v51, 1  ;;  %v915_v41 = vor.u32 %v914_v23, %v910_v10  ;;  %1614 = vmatprep.subr.bf16.mxu0 %v1725_v9  ;;  %v1147_v54 = vrot.slane %v1580_v7, 1 }
 0x1f1   : > { %916 = vrot.lane.b32.xlu0 %v866_v12, %s1755_s8  ;;  %v1078_v12 = vor.u32 %v1077_v21, %v1073_v0  ;;  %1626 = vmatprep.subr.bf16.mxu1 %v1725_v9 }
 0x1f2   : > { %v1064_v48 = vor.u32 %v1063_v33, %v1059_v34 }
 0x1f3   : > { %1615 = vmatpush3.bf16.msra.mxu0 %v1725_v9  ;;  %1629 = vmatpush3.bf16.msra.mxu1 %v1725_v9 }
 0x1f4   : > { %746 = vrot.lane.b32.xlu1 %v731_v31, %s1745_s27  ;;  %v1057_v31 = vor.u32 %v1056_v42, %v1052_v32 }
 0x1f5   : > { %924 = vrot.lane.b32.xlu0 %v894_v3, %s1755_s8  ;;  %v1726_v3 = vld [vmem:[#allocation2] sm:$0xf] }
 0x1f6   : > { %v1167_v26 = vsel %vm1164_vm7, %v1726_v3, %v1828_v16 }
 0x1f7   : > { %v1191_v16 = vsel %vm1189_vm8, %v1167_v26, %v1832_v18  ;;  %v1146_v18 = vrot.slane %v1579_v53, 1 }
 0x1f8   : > { %918 = vrot.lane.b32.xlu1 %v873_v43, %s1755_s8 }
 0x1f9   : > { %920 = vrot.lane.b32.xlu0 %v880_v30, %s1755_s8  ;;  %v1092_v30 = vor.u32 %v1091_v45, %v1087_v36 }
 0x1fc   : > { %926 = vrot.lane.b32.xlu1 %v901_v39, %s1755_s8 }
 0x1fd   : > { %928 = vrot.lane.b32.xlu0 %v908_v25, %s1755_s8 }
 0x200   : > { %922 = vrot.lane.b32.xlu1 %v887_v29, %s1755_s8 }
 0x201   : > { %1100 = vrot.lane.b32.xlu0 %v1050_v58, %s1748_s30 }
 0x204   : > { %930 = vrot.lane.b32.xlu1 %v915_v41, %s1755_s8 }
 0x205   : > { %1108 = vrot.lane.b32.xlu0 %v1078_v12, %s1748_s30 }
 0x208   : > { %1102 = vrot.lane.b32.xlu1 %v1057_v31, %s1748_s30 }
 0x209   : > { %1104 = vrot.lane.b32.xlu0 %v1064_v48, %s1748_s30 }
 0x20b   : > { %v821_v43 = vpop.permute.xlu0 %820 }
 0x20c   : > { %v2129_v59 = vsel %vm1206_vm9, %v1191_v16, %v821_v43  ;;  %1110 = vrot.lane.b32.xlu1 %v1085_v8, %s1748_s30 }
 0x20d   : > { %1112 = vrot.lane.b32.xlu0 %v1092_v30, %s1748_s30 }
 0x210   : > { %1106 = vrot.lane.b32.xlu1 %v1071_v20, %s1748_s30  ;;  %v823_v47 = vpop.permute.xlu1 %822  ;;  %v2135_v56 = vpop.permute.xlu0 %828 }
 0x211   : > { %1160 = vrot.lane.b32.xlu0 %v1146_v18, %s1754_s7 }
 0x214   : > { %1162 = vrot.lane.b32.xlu1 %v1147_v54, %s1754_s7 }
 0x216   : > { %v2138_v25 = vpop.permute.xlu1 %830 }
 0x217   : > { %v2140_v39 = vpop.permute.xlu0 %824 }
 0x21a   : > { %v2142_v62 = vpop.permute.xlu1 %826 }
 0x21b   : > { %v2144_v60 = vpop.permute.xlu0 %832 }
 0x21e   : > { %v2146_v6 = vpop.permute.xlu1 %834 }
 0x21f   : > { %v2148_v11 = vpop.permute.xlu0 %1004 }
 0x222   : > { %v2150_v14 = vpop.permute.xlu1 %1006 }
 0x223   : > { %v2152_v19 = vpop.permute.xlu0 %1012 }
 0x226   : > { %v2154_v13 = vpop.permute.xlu1 %1014 }
 0x227   : > { %v2156_v58 = vpop.permute.xlu0 %1008 }
 0x22a   : > { %v2158_v21 = vpop.permute.xlu1 %1010 }
 0x22b   : > { %v2160_v51 = vpop.permute.xlu0 %1016 }
 0x22c   : > { %2313 = vst [vmem:[#allocation4_spill] sm:$0xff] %v2160_v51 }
 0x22e   : > { %v783_v29 = vpop.permute.xlu1 %782 }
 0x22f   : > { %v789_v23 = vpop.permute.xlu0 %788 }
 0x232   : > { %v791_v61 = vpop.permute.xlu1 %790 }
 0x233   : > { %v785_v27 = vpop.permute.xlu0 %784 }
 0x236   : > { %v787_v0 = vpop.permute.xlu1 %786 }
 0x237   : > { %v2162_v38 = vpop.permute.xlu0 %792 }
 0x23a   : > { %v795_v10 = vpop.permute.xlu1 %794 }
 0x23b   : > { %v965_v24 = vpop.permute.xlu0 %964 }
 0x23e   : > { %v967_v12 = vpop.permute.xlu1 %966 }
 0x23f   : > { %v973_v33 = vpop.permute.xlu0 %972 }
 0x242   : > { %v2164_v41 = vpop.permute.xlu1 %974 }
 0x243   : > { %v2166_v42 = vpop.permute.xlu0 %968 }
 0x246   : > { %v2168_v1 = vpop.permute.xlu1 %970 }
 0x247   : > { %v2170_v46 = vpop.permute.xlu0 %976 }
 0x24a   : > { %v2172_v34 = vpop.permute.xlu1 %978 }
 0x24b   : > { %v2174_v32 = vpop.permute.xlu0 %1148 }
 0x24e   : > { %v2176_v3 = vpop.permute.xlu1 %1150 }
 0x24f   : > { %v2178_v26 = vpop.permute.xlu0 %1156 }
 0x252   : > { %v2180_v48 = vpop.permute.xlu1 %1158 }
 0x253   : > { %v2182_v9 = vpop.permute.xlu0 %1152 }
 0x256   : > { %v2184_v31 = vpop.permute.xlu1 %1154 }
 0x257   : > { %v741_v45 = vpop.permute.xlu0 %740 }
 0x258   : > { %v1179_v5 = vsel %vm1164_vm7, %v2009_v49, %v741_v45 }
 0x259   : > { %v1199_v20 = vsel %vm1189_vm8, %v1179_v5, %v789_v23 }
 0x25a   : > { %v735_v52 = vpop.permute.xlu1 %734  ;;  %v1216_v45 = vsel %vm1206_vm9, %v1199_v20, %v2135_v56 }
 0x25b   : > { %v737_v50 = vpop.permute.xlu0 %736  ;;  %v1170_v53 = vsel %vm1164_vm7, %v2019_v63, %v735_v52 }
 0x25c   : > { %v1193_v7 = vsel %vm1189_vm8, %v1170_v53, %v783_v29  ;;  %v1173_v63 = vsel %vm1164_vm7, %v2027_v22, %v737_v50 }
 0x25d   : > { %v1210_v52 = vsel %vm1206_vm9, %v1193_v7, %v823_v47  ;;  %v1195_v22 = vsel %vm1189_vm8, %v1173_v63, %v785_v27 }
 0x25e   : > { %v743_v37 = vpop.permute.xlu1 %742 }
 0x25f   : > { %v745_v36 = vpop.permute.xlu0 %744  ;;  %v1182_v18 = vsel %vm1164_vm7, %v2036_v35, %v743_v37 }
 0x260   : > { %v1201_v49 = vsel %vm1189_vm8, %v1182_v18, %v791_v61  ;;  %v1185_v37 = vsel %vm1164_vm7, %v2040_v40, %v745_v36 }
 0x262   : > { %v739_v44 = vpop.permute.xlu1 %738 }
 0x263   : > { %v917_v16 = vpop.permute.xlu0 %916  ;;  %v1176_v35 = vsel %vm1164_vm7, %v2051_v55, %v739_v44 }
 0x264   : > { %v1225_v54 = vsel %vm1223_vm10, %v2129_v59, %v917_v16 }
 0x265   : > { %v1242_v23 = vsel %vm1240_vm11, %v1225_v54, %v965_v24  ;;  %v1218_v24 = vsel %vm1206_vm9, %v1201_v49, %v2138_v25  ;;  %v1203_v25 = vsel %vm1189_vm8, %v1185_v37, %v2162_v38 }
 0x266   : > { %v747_v4 = vpop.permute.xlu1 %746  ;;  %v1259_v27 = vsel %vm1257_vm12, %v1242_v23, %v2148_v11 }
 0x267   : > { %v925_v30 = vpop.permute.xlu0 %924  ;;  %v1188_v59 = vsel %vm1164_vm7, %v2060_v28, %v747_v4  ;;  %v1197_v28 = vsel %vm1189_vm8, %v1176_v35, %v787_v0  ;;  %v1212_v4 = vsel %vm1206_vm9, %v1195_v22, %v2140_v39 }
 0x268   : > { %v1233_v47 = vsel %vm1223_vm10, %v1216_v45, %v925_v30  ;;  %v1205_v44 = vsel %vm1189_vm8, %v1188_v59, %v795_v10  ;;  %v1214_v39 = vsel %vm1206_vm9, %v1197_v28, %v2142_v62 }
 0x269   : > { %v1250_v16 = vsel %vm1240_vm11, %v1233_v47, %v973_v33 }
 0x26a   : > { %v919_v8 = vpop.permute.xlu1 %918  ;;  %v1267_v30 = vsel %vm1257_vm12, %v1250_v16, %v2152_v19 }
 0x26b   : > { %v921_v43 = vpop.permute.xlu0 %920  ;;  %v1227_v29 = vsel %vm1223_vm10, %v1210_v52, %v919_v8 }
 0x26c   : > { %v1244_v55 = vsel %vm1240_vm11, %v1227_v29, %v967_v12  ;;  %v1229_v0 = vsel %vm1223_vm10, %v1212_v4, %v921_v43  ;;  %v2315_v29 = vld [vmem:[#allocation3_spill] sm:$0xff] }
 0x26d   : > { %v1261_v10 = vsel %vm1257_vm12, %v1244_v55, %v2150_v14 }
 0x26e   : > { %v927_v57 = vpop.permute.xlu1 %926 }
 0x26f   : > { %v929_v2 = vpop.permute.xlu0 %928  ;;  %v1235_v56 = vsel %vm1223_vm10, %v1218_v24, %v927_v57 }
 0x270   : > { %v1252_v11 = vsel %vm1240_vm11, %v1235_v56, %v2164_v41  ;;  %v1246_v41 = vsel %vm1240_vm11, %v1229_v0, %v2166_v42 }
 0x271   : > { %v1269_v19 = vsel %vm1257_vm12, %v1252_v11, %v2154_v13 }
 0x272   : > { %v923_v17 = vpop.permute.xlu1 %922 }
 0x273   : > { %v1101_v51 = vpop.permute.xlu0 %1100  ;;  %v1231_v38 = vsel %vm1223_vm10, %v1214_v39, %v923_v17  ;;  %v1220_v17 = vsel %vm1206_vm9, %v1203_v25, %v2144_v60  ;;  %v1263_v60 = vsel %vm1257_vm12, %v1246_v41, %v2156_v58 }
 0x274   : > { %v1276_v40 = vsel %vm1274_vm13, %v1259_v27, %v1101_v51  ;;  %v1222_v51 = vsel %vm1206_vm9, %v1205_v44, %v2146_v6 }
 0x275   : > { %v1293_v14 = vsel %vm1291_vm14, %v1276_v40, %v2174_v32  ;;  %v1237_v32 = vsel %vm1223_vm10, %v1220_v17, %v929_v2 }
 0x276   : > { %v931_v61 = vpop.permute.xlu1 %930 }
 0x277   : > { %v1109_v50 = vpop.permute.xlu0 %1108  ;;  %v1239_v62 = vsel %vm1223_vm10, %v1222_v51, %v931_v61 }
 0x278   : > { %v1284_v6 = vsel %vm1274_vm13, %v1267_v30, %v1109_v50  ;;  %v1256_v5 = vsel %vm1240_vm11, %v1239_v62, %v2172_v34 }
 0x279   : > { %v1301_v13 = vsel %vm1291_vm14, %v1284_v6, %v2178_v26  ;;  %v1273_v58 = vsel %vm1257_vm12, %v1256_v5, %v1826_v15 }
 0x27a   : > { %v1103_v12 = vpop.permute.xlu1 %1102  ;;  %v1290_v35 = vsel %vm1274_vm13, %v1273_v58, %v2315_v29 }
 0x27b   : > { %v1105_v36 = vpop.permute.xlu0 %1104  ;;  %v1278_v33 = vsel %vm1274_vm13, %v1261_v10, %v1103_v12 }
 0x27c   : > { %v1295_v8 = vsel %vm1291_vm14, %v1278_v33, %v2176_v3  ;;  %v1248_v3 = vsel %vm1240_vm11, %v1231_v38, %v2168_v1  ;;  %v1280_v2 = vsel %vm1274_vm13, %v1263_v60, %v1105_v36  ;;  %v1254_v1 = vsel %vm1240_vm11, %v1237_v32, %v2170_v46  ;;  %v2314_v46 = vld [vmem:[#allocation4_spill] sm:$0xff] }
 0x27d   : > { %v1582_v43 = vcombine.low %v1293_v14, %v1295_v8  ;;  %v1265_v20 = vsel %vm1257_vm12, %v1248_v3, %v2158_v21  ;;  %v1297_v26 = vsel %vm1291_vm14, %v1280_v2, %v2182_v9  ;;  %v1271_v52 = vsel %vm1257_vm12, %v1254_v1, %v2314_v46 }
 0x27e   : > { %v1111_v53 = vpop.permute.xlu1 %1110 }
 0x27f   : > { %v1113_v57 = vpop.permute.xlu0 %1112  ;;  %v1286_v42 = vsel %vm1274_vm13, %v1269_v19, %v1111_v53  ;;  %1616 = vmatprep.mubr.msk.bf16.mxu0 %vm1355_vm15, %v1582_v43 }
 0x280   : > { %v1303_v7 = vsel %vm1291_vm14, %v1286_v42, %v2180_v48  ;;  %v1288_v49 = vsel %vm1274_vm13, %v1271_v52, %v1113_v57 }
 0x281   : > { %v1584_v18 = vcombine.low %v1301_v13, %v1303_v7 }
 0x282   : > { %v1107_v54 = vpop.permute.xlu1 %1106 }
 0x283   : > { %v1282_v34 = vsel %vm1274_vm13, %v1265_v20, %v1107_v54  ;;  %1620 = vmatprep.mubr.msk.bf16.mxu1 %vm1355_vm15, %v1584_v18  ;;  %v1161_v63 = vpop.permute.xlu0 %1160 }
 0x284   : > { %v1299_v48 = vsel %vm1291_vm14, %v1282_v34, %v2184_v31  ;;  %v1305_v59 = vsel %vm1291_vm14, %v1288_v49, %v1161_v63  ;;  %v1581_v31 = vld [vmem:[%s2306_s2] ss:$0 sm:$0xff] }
 0x285   : > { %v1583_v21 = vcombine.low %v1297_v26, %v1299_v48 }
 0x286   : > { %v1163_v23 = vpop.permute.xlu1 %1162 }
 0x287   : > { %v1307_v15 = vsel %vm1291_vm14, %v1290_v35, %v1163_v23  ;;  %1617 = vmatmul.mubr.msk.bf16.vlgmr.msra.gmra.mxu0 %vm1355_vm15, %v1583_v21 }
 0x288   : > { %v1585_v9 = vcombine.low %v1305_v59, %v1307_v15 }
 0x28a   : > { %1621 = vmatmul.mubr.msk.bf16.vlgmr.msra.gmra.mxu1 %vm1355_vm15, %v1585_v9 }
 0x347   : > { %v1618_v45 = vpop.f32.mrf.mxu0 }
 0x348   : > { %v1415_v22 = vadd.f32 %v1618_v45, %v1581_v31 }
 0x349   : > { %v1406_v47 = vpop.f32.mrf.mxu0 }
 0x34a   : > { %1439 = vst.msk [vmem:[%s167_s23 + $0x10] sm:$0xff] %vm1189_vm8, %v1415_v22  ;;  %v1407_v61 = vadd.f32 %v1581_v31, %v1406_v47  ;;  %v1622_v50 = vpop.f32.mrf.mxu1 }
 0x34b   : > { %v1431_v37 = vadd.f32 %v1622_v50, %v1581_v31  ;;  %v1619_v55 = vpop.f32.mrf.mxu0 }
 0x34c   : > { %1437 = vst.msk [vmem:[%s167_s23] sm:$0xff] %vm1189_vm8, %v1407_v61  ;;  %v1418_v24 = vadd.f32 %v1619_v55, %v1581_v31  ;;  %v1422_v28 = vpop.f32.mrf.mxu1 }
 0x34d   : > { %1443 = vst.msk [vmem:[%s167_s23 + $0x30] sm:$0xff] %vm1189_vm8, %v1431_v37  ;;  %v1423_v44 = vadd.f32 %v1581_v31, %v1422_v28  ;;  %v1409_v56 = vpop.f32.mrf.mxu0 }
 0x34e   : > { %1440 = vst.msk [vmem:[%s167_s23 + $0x18] sm:$0xff] %vm1189_vm8, %v1418_v24  ;;  %v1410_v27 = vadd.f32 %v1581_v31, %v1409_v56  ;;  %v1623_v16 = vpop.f32.mrf.mxu1 }
 0x34f   : > { %1441 = vst.msk [vmem:[%s167_s23 + $0x20] sm:$0xff] %vm1189_vm8, %v1423_v44  ;;  %v1434_v4 = vadd.f32 %v1623_v16, %v1581_v31 }
 0x350   : > { %1438 = vst.msk [vmem:[%s167_s23 + $0x8] sm:$0xff] %vm1189_vm8, %v1410_v27  ;;  %v1425_v40 = vpop.f32.mrf.mxu1 }
 0x351   : > { %1444 = vst.msk [vmem:[%s167_s23 + $0x38] sm:$0xff] %vm1189_vm8, %v1434_v4  ;;  %v1426_v25 = vadd.f32 %v1581_v31, %v1425_v40 }
 0x353   : > { %1442 = vst.msk [vmem:[%s167_s23 + $0x28] sm:$0xff] %vm1189_vm8, %v1426_v25 }
 0x354 PF: > { %s13_s12 = sadd.s32 1, %s1734_s12  }
 0x355   : > { %p10_p5 = scmp.ge.s32.totalorder %s13_s12, 4  }
 0x357   :  { %12 = sbr.rel (!%p10_p5) target bundleno = 1 (0x1), region = 64 }

</bundles_post_ra>
